<compile_context>
chip_gen: v7x
topology: tpu7x:2x2x1
jax: 0.10.0
libtpu: 0.0.40
codegen_flags: <defaults>
</compile_context>

<pallas_src>
import functools
import numpy as np
import jax
import jax.numpy as jnp
from jax.experimental import pallas as pl
from jax.experimental.pallas import tpu as pltpu


C_OUT = 128            # conv output channels, fixed by the module
POOL_K, POOL_S = 5, 3  # AvgPool2d(kernel_size=5, stride=3)
BN_EPS = 1e-5
FC_IN = 2048           # 128 * pooled_spatial, fixed by Linear(2048, n_hidden)
LANE = 128


def _round_up(x, m):
    return (x + m - 1) // m * m


# ----------------------------------------------------------------------------
# Fused kernel: pool -> conv1x1(+BN folded) -> ReLU -> FC1 -> ReLU -> FC2
# ----------------------------------------------------------------------------
def aux_block_kernel(x_ref, pmat_ref, wconv_ref, bconv_ref,
                     w1_ref, b1_ref, w2_ref, b2_ref, o_ref, *, bb, cin_pad, p):
    # AvgPool2d(5,3) as one bf16 matmul batched over (batch*channel) sublanes:
    #   (bb*Cin, H*W) @ (H*W, P) -> (bb*Cin, P), f32 accumulation.
    # Pool weights are 0/1 (exact in bf16); the 1/25 factor lives in the conv weight.
    pooled = jnp.dot(x_ref[...].astype(jnp.bfloat16), pmat_ref[...],
                     preferred_element_type=jnp.float32)

    # Small f32 relayout (bb, Cin, P) -> (bb, P, Cin) so the 1x1 conv is a dense
    # (bb*P, Cin) @ (Cin, 128) matmul (no structural zeros, works at real Cin).
    pooled_t = jnp.swapaxes(pooled.reshape(bb, cin_pad, p), 1, 2)
    pooled_t = pooled_t.reshape(bb * p, cin_pad).astype(jnp.bfloat16)

    # 1x1 conv with BatchNorm (eval) + conv bias + 1/25 pool scale folded in.
    conv = jnp.dot(pooled_t, wconv_ref[...],
                   preferred_element_type=jnp.float32) + bconv_ref[...]   # (bb*P, 128)
    act = jnp.maximum(conv, 0.0).astype(jnp.bfloat16)

    # Flatten to (bb, 2048); feature order is (p*128 + c), which w1 was permuted
    # to match host-side, so this is layout plumbing only.
    act2 = act.reshape(bb, p * C_OUT)

    h = jnp.dot(act2, w1_ref[...], preferred_element_type=jnp.float32) + b1_ref[...]
    h = jnp.maximum(h, 0.0).astype(jnp.bfloat16)
    # TODO(synk): nn.Dropout(p=0.7) is identity in eval mode; train-mode masking omitted.
    o_ref[...] = jnp.dot(h, w2_ref[...], preferred_element_type=jnp.float32) + b2_ref[...]


# ----------------------------------------------------------------------------
# Host-side (one-time) preparation
# ----------------------------------------------------------------------------
def _avgpool_matrix(H, W, k, s):
    """(H*W, Ho*Wo) 0/1 matrix; the 1/k^2 normalization is folded into the conv weight."""
    Ho = (H - k) // s + 1
    Wo = (W - k) // s + 1
    pmat = np.zeros((H * W, Ho * Wo), dtype=np.float32)
    for i in range(Ho):
        for j in range(Wo):
            col = i * Wo + j
            for r in range(k):
                for c in range(k):
                    pmat[(i * s + r) * W + (j * s + c), col] = 1.0
    return pmat, Ho, Wo


def prepare_params(params, C_in, H, W):
    """Precompute everything that does not depend on the input batch (called once)."""
    pmat, Ho, Wo = _avgpool_matrix(H, W, POOL_K, POOL_S)
    P = Ho * Wo
    assert C_OUT * P == FC_IN, "AuxBlock requires 128 * pooled_spatial == 2048 (H=W=14)"

    cin_pad = _round_up(C_in, 8)          # sublane-aligned channel count (zero-padded)

    # Fold BatchNorm (eval), conv bias and the 1/25 avg-pool factor into the conv.
    scale = params["bn_gamma"] / jnp.sqrt(params["bn_var"] + BN_EPS)              # (128,)
    w_eff = (scale[:, None] * params["w_conv"]) / float(POOL_K * POOL_K)          # (128, Cin)
    b_eff = scale * (params["b_conv"] - params["bn_mean"]) + params["bn_beta"]    # (128,)
    w_conv_t = jnp.zeros((cin_pad, C_OUT), jnp.float32).at[:C_in, :].set(w_eff.T)

    n_hidden = params["w1"].shape[0]
    n_out = params["w2"].shape[0]
    nh_pad = _round_up(n_hidden, LANE)
    no_pad = _round_up(n_out, LANE)

    # FC1: permute input features from NCHW-flat order (c*P + p) to the kernel's
    # (p*128 + c) order, then zero-pad the hidden dim to a lane multiple.
    w1_t = params["w1"].T                                             # (2048, n_hidden)
    w1_t = w1_t.reshape(C_OUT, P, n_hidden).transpose(1, 0, 2).reshape(FC_IN, n_hidden)
    w1_t = jnp.zeros((FC_IN, nh_pad), jnp.float32).at[:, :n_hidden].set(w1_t)
    b1 = jnp.zeros((1, nh_pad), jnp.float32).at[0, :n_hidden].set(params["b1"])

    w2_t = jnp.zeros((nh_pad, no_pad), jnp.float32).at[:n_hidden, :n_out].set(params["w2"].T)
    b2 = jnp.zeros((1, no_pad), jnp.float32).at[0, :n_out].set(params["b2"])

    return {
        "pmat": jnp.asarray(pmat, jnp.bfloat16),           # (H*W, P), exact 0/1 in bf16
        "w_conv_t": w_conv_t.astype(jnp.bfloat16),         # (cin_pad, 128)
        "b_conv": b_eff.reshape(1, C_OUT).astype(jnp.float32),
        "w1_t": w1_t.astype(jnp.bfloat16),                 # (2048, nh_pad), permuted
        "b1": b1,
        "w2_t": w2_t.astype(jnp.bfloat16),                 # (nh_pad, no_pad)
        "b2": b2,
    }


# ----------------------------------------------------------------------------
# Forward wrapper
# ----------------------------------------------------------------------------
def _pick_batch_block(B, batch_block):
    if B <= batch_block:
        # Split into two grid steps when cheaply possible so v7x's second
        # TensorCore gets work from the "parallel" batch axis.
        if B >= 16 and (B // 2) % 8 == 0:
            return B // 2
        return B
    return batch_block


def aux_block_forward(x_nchw, prepped, *, n_out, batch_block=128):
    B, C_in, H, W = x_nchw.shape
    HW, P = prepped["pmat"].shape
    cin_pad = prepped["w_conv_t"].shape[0]
    nh_pad = prepped["w1_t"].shape[1]
    no_pad = prepped["w2_t"].shape[1]
    assert H * W == HW and C_in <= cin_pad

    bb = _pick_batch_block(B, batch_block)

    # Single-buffered constants; only x/out are double-buffered by the pipeline.
    weight_bytes = (prepped["pmat"].size * 2 + prepped["w_conv_t"].size * 2
                    + prepped["w1_t"].size * 2 + prepped["w2_t"].size * 2
                    + (prepped["b_conv"].size + prepped["b1"].size + prepped["b2"].size) * 4)

    def vmem_estimate(bb_):
        x_blk = bb_ * cin_pad * HW * 4
        out_blk = bb_ * no_pad * 4
        interm = bb_ * (cin_pad * P * 4 * 2 + P * C_OUT * 4 + FC_IN * 2 + nh_pad * 4)
        return 2 * x_blk + 2 * out_blk + weight_bytes + interm

    # Cap the batch block so the working set fits comfortably on v7x (64 MiB VMEM).
    while bb > 8 and vmem_estimate(bb) > 40 * 2**20:
        bb = max(8, _round_up(bb // 2, 8))

    B_pad = _round_up(B, bb)
    grid = (B_pad // bb,)

    # Zero-pad batch/channels (weights for padded channels are zero) and do the
    # free NCHW flatten to (B*Cin, H*W) row-blocks.
    x = x_nchw
    if B_pad != B or cin_pad != C_in:
        x = jnp.pad(x, ((0, B_pad - B), (0, cin_pad - C_in), (0, 0), (0, 0)))
    x2d = x.reshape(B_pad * cin_pad, HW)

    kernel = functools.partial(aux_block_kernel, bb=bb, cin_pad=cin_pad, p=P)

    flops = 2 * B_pad * (cin_pad * HW * P + P * cin_pad * C_OUT
                         + FC_IN * nh_pad + nh_pad * no_pad)
    bytes_accessed = int(x2d.size * 4 + weight_bytes + B_pad * no_pad * 4)

    def const_spec(shape):
        return pl.BlockSpec(shape, lambda b: (0, 0), pipeline_mode=pl.Buffered(1))

    y = pl.pallas_call(
        kernel,
        out_shape=jax.ShapeDtypeStruct((B_pad, no_pad), jnp.float32),
        grid=grid,
        in_specs=[
            pl.BlockSpec((bb * cin_pad, HW), lambda b: (b, 0)),   # x (batch-blocked rows)
            const_spec((HW, P)),                                  # pool matrix (bf16, 0/1)
            const_spec((cin_pad, C_OUT)),                         # conv weight (BN + 1/25 folded)
            const_spec((1, C_OUT)),                               # conv/BN bias
            const_spec((FC_IN, nh_pad)),                          # w1^T (permuted, padded)
            const_spec((1, nh_pad)),                              # b1
            const_spec((nh_pad, no_pad)),                         # w2^T (padded)
            const_spec((1, no_pad)),                              # b2
        ],
        out_specs=pl.BlockSpec((bb, no_pad), lambda b: (b, 0)),   # lane-dense (128) output
        compiler_params=pltpu.CompilerParams(
            dimension_semantics=("parallel",),
            vmem_limit_bytes=int(min(max(2 * vmem_estimate(bb), 16 * 2**20), 64 * 2**20))),
        cost_estimate=pl.CostEstimate(flops=flops, transcendentals=0,
                                      bytes_accessed=bytes_accessed),
    )(x2d, prepped["pmat"], prepped["w_conv_t"], prepped["b_conv"],
      prepped["w1_t"], prepped["b1"], prepped["w2_t"], prepped["b2"])

    return y[:B, :n_out]


# ----------------------------------------------------------------------------
# Torch-layout parameter initialization (as the nn.Module would hold them)
# ----------------------------------------------------------------------------
def init_params(key, n_in, n_hidden, n_out):
    ks = jax.random.split(key, 8)
    return {
        # Conv2d(n_in, 128, kernel_size=1): weight (128, n_in, 1, 1) -> (128, n_in)
        "w_conv": 0.1 * jax.random.normal(ks[0], (C_OUT, n_in), jnp.float32),
        "b_conv": 0.1 * jax.random.normal(ks[1], (C_OUT,), jnp.float32),
        # BatchNorm2d(128), eval-mode running stats
        "bn_gamma": jnp.ones((C_OUT,), jnp.float32)
                    + 0.05 * jax.random.normal(ks[2], (C_OUT,), jnp.float32),
        "bn_beta": 0.05 * jax.random.normal(ks[3], (C_OUT,), jnp.float32),
        "bn_mean": jnp.zeros((C_OUT,), jnp.float32),
        "bn_var": jnp.ones((C_OUT,), jnp.float32),
        # Linear(2048, n_hidden), Linear(n_hidden, n_out)  (torch layout: (out, in))
        "w1": 0.02 * jax.random.normal(ks[4], (n_hidden, FC_IN), jnp.float32),
        "b1": 0.02 * jax.random.normal(ks[5], (n_hidden,), jnp.float32),
        "w2": 0.02 * jax.random.normal(ks[6], (n_out, n_hidden), jnp.float32),
        "b2": 0.02 * jax.random.normal(ks[7], (n_out,), jnp.float32),
    }


if __name__ == "__main__":
    key = jax.random.PRNGKey(0)
    k_x, k_p = jax.random.split(key)

    # Spatial 14x14 is forced by Linear(2048, .): 128 * ((14-5)//3 + 1)^2 == 2048.
    B, C_in, H, W = 2, 4, 14, 14
    n_hidden, n_out = 64, 16

    x = jax.random.normal(k_x, (B, C_in, H, W), jnp.float32)
    params = init_params(k_p, C_in, n_hidden, n_out)
    prepped = prepare_params(params, C_in, H, W)   # one-time host prep (folds, permute, pad)

    fwd = jax.jit(functools.partial(aux_block_forward, n_out=n_out))
    y = fwd(x, prepped)
    jax.block_until_ready(y)
    assert y.shape == (B, n_out) and y.dtype == jnp.float32
    print("KERNEL_OK")
</pallas_src>

<mosaic_0001>
module attributes {stable_mosaic.version = 11 : i64} {
  func.func @aux_block_kernel(%arg0: i32, %arg1: memref<16x196xf32, #tpu.memory_space<vmem>>, %arg2: memref<196x16xbf16, #tpu.memory_space<vmem>>, %arg3: memref<8x128xbf16, #tpu.memory_space<vmem>>, %arg4: memref<1x128xf32, #tpu.memory_space<vmem>>, %arg5: memref<2048x128xbf16, #tpu.memory_space<vmem>>, %arg6: memref<1x128xf32, #tpu.memory_space<vmem>>, %arg7: memref<128x128xbf16, #tpu.memory_space<vmem>>, %arg8: memref<1x128xf32, #tpu.memory_space<vmem>>, %arg9: memref<2x128xf32, #tpu.memory_space<vmem>>) attributes {dimension_semantics = [#tpu.dimension_semantics<parallel>], iteration_bounds = array<i64: 1>, scalar_prefetch = 0 : i64, scratch_operands = 0 : i64, tpu.core_type = #tpu.core_type<tc>, window_params = [{transform_indices = @transform_0, window_bounds = array<i64: 16, 196>}, {pipeline_mode = #tpu.pipeline_mode<synchronous>, transform_indices = @transform_1, window_bounds = array<i64: 196, 16>}, {pipeline_mode = #tpu.pipeline_mode<synchronous>, transform_indices = @transform_2, window_bounds = array<i64: 8, 128>}, {pipeline_mode = #tpu.pipeline_mode<synchronous>, transform_indices = @transform_3, window_bounds = array<i64: 1, 128>}, {pipeline_mode = #tpu.pipeline_mode<synchronous>, transform_indices = @transform_4, window_bounds = array<i64: 2048, 128>}, {pipeline_mode = #tpu.pipeline_mode<synchronous>, transform_indices = @transform_5, window_bounds = array<i64: 1, 128>}, {pipeline_mode = #tpu.pipeline_mode<synchronous>, transform_indices = @transform_6, window_bounds = array<i64: 128, 128>}, {pipeline_mode = #tpu.pipeline_mode<synchronous>, transform_indices = @transform_7, window_bounds = array<i64: 1, 128>}, {transform_indices = @transform_8, window_bounds = array<i64: 2, 128>}]} {
    %c0 = arith.constant 0 : index
    %c0_0 = arith.constant 0 : index
    %0 = vector.load %arg1[%c0, %c0_0] : memref<16x196xf32, #tpu.memory_space<vmem>>, vector<16x196xf32>
    %1 = arith.truncf %0 : vector<16x196xf32> to vector<16x196xbf16>
    %c0_1 = arith.constant 0 : index
    %c0_2 = arith.constant 0 : index
    %2 = vector.load %arg2[%c0_1, %c0_2] : memref<196x16xbf16, #tpu.memory_space<vmem>>, vector<196x16xbf16>
    %cst = arith.constant dense<0.000000e+00> : vector<16x16xf32>
    %3 = tpu.matmul %1, %2, %cst {dimension_numbers = #tpu.dot_dimension_numbers<[1], [0], [0], [1], [0, 0, 1, 1], [], []>} : vector<16x196xbf16>, vector<196x16xbf16>, vector<16x16xf32> -> vector<16x16xf32>
    %4 = vector.shape_cast %3 : vector<16x16xf32> to vector<2x8x16xf32>
    %5 = tpu.transpose %4, [0, 2, 1] : vector<2x8x16xf32> -> vector<2x16x8xf32>
    %6 = vector.shape_cast %5 : vector<2x16x8xf32> to vector<32x8xf32>
    %7 = arith.truncf %6 : vector<32x8xf32> to vector<32x8xbf16>
    %c0_3 = arith.constant 0 : index
    %c0_4 = arith.constant 0 : index
    %8 = vector.load %arg3[%c0_3, %c0_4] : memref<8x128xbf16, #tpu.memory_space<vmem>>, vector<8x128xbf16>
    %cst_5 = arith.constant dense<0.000000e+00> : vector<32x128xf32>
    %9 = tpu.matmul %7, %8, %cst_5 {dimension_numbers = #tpu.dot_dimension_numbers<[1], [0], [0], [1], [0, 0, 1, 1], [], []>} : vector<32x8xbf16>, vector<8x128xbf16>, vector<32x128xf32> -> vector<32x128xf32>
    %c0_6 = arith.constant 0 : index
    %c0_7 = arith.constant 0 : index
    %10 = vector.load %arg4[%c0_6, %c0_7] : memref<1x128xf32, #tpu.memory_space<vmem>>, vector<1x128xf32>
    %11 = vector.broadcast %10 : vector<1x128xf32> to vector<32x128xf32>
    %12 = arith.addf %9, %11 : vector<32x128xf32>
    %cst_8 = arith.constant 0.000000e+00 : f32
    %13 = vector.broadcast %cst_8 : f32 to vector<32x128xf32>
    %14 = arith.maximumf %12, %13 : vector<32x128xf32>
    %15 = arith.truncf %14 : vector<32x128xf32> to vector<32x128xbf16>
    %16 = vector.shape_cast %15 : vector<32x128xbf16> to vector<2x2048xbf16>
    %c0_9 = arith.constant 0 : index
    %c0_10 = arith.constant 0 : index
    %17 = vector.load %arg5[%c0_9, %c0_10] : memref<2048x128xbf16, #tpu.memory_space<vmem>>, vector<2048x128xbf16>
    %cst_11 = arith.constant dense<0.000000e+00> : vector<2x128xf32>
    %18 = tpu.matmul %16, %17, %cst_11 {dimension_numbers = #tpu.dot_dimension_numbers<[1], [0], [0], [1], [0, 0, 1, 1], [], []>} : vector<2x2048xbf16>, vector<2048x128xbf16>, vector<2x128xf32> -> vector<2x128xf32>
    %c0_12 = arith.constant 0 : index
    %c0_13 = arith.constant 0 : index
    %19 = vector.load %arg6[%c0_12, %c0_13] : memref<1x128xf32, #tpu.memory_space<vmem>>, vector<1x128xf32>
    %20 = vector.broadcast %19 : vector<1x128xf32> to vector<2x128xf32>
    %21 = arith.addf %18, %20 : vector<2x128xf32>
    %cst_14 = arith.constant 0.000000e+00 : f32
    %22 = vector.broadcast %cst_14 : f32 to vector<2x128xf32>
    %23 = arith.maximumf %21, %22 : vector<2x128xf32>
    %24 = arith.truncf %23 : vector<2x128xf32> to vector<2x128xbf16>
    %c0_15 = arith.constant 0 : index
    %c0_16 = arith.constant 0 : index
    %25 = vector.load %arg7[%c0_15, %c0_16] : memref<128x128xbf16, #tpu.memory_space<vmem>>, vector<128x128xbf16>
    %cst_17 = arith.constant dense<0.000000e+00> : vector<2x128xf32>
    %26 = tpu.matmul %24, %25, %cst_17 {dimension_numbers = #tpu.dot_dimension_numbers<[1], [0], [0], [1], [0, 0, 1, 1], [], []>} : vector<2x128xbf16>, vector<128x128xbf16>, vector<2x128xf32> -> vector<2x128xf32>
    %c0_18 = arith.constant 0 : index
    %c0_19 = arith.constant 0 : index
    %27 = vector.load %arg8[%c0_18, %c0_19] : memref<1x128xf32, #tpu.memory_space<vmem>>, vector<1x128xf32>
    %28 = vector.broadcast %27 : vector<1x128xf32> to vector<2x128xf32>
    %29 = arith.addf %26, %28 : vector<2x128xf32>
    %c0_20 = arith.constant 0 : index
    %c0_21 = arith.constant 0 : index
    %30 = vector.load %arg9[%c0_20, %c0_21] : memref<2x128xf32, #tpu.memory_space<vmem>>, vector<2x128xf32>
    tpu.vector_store %arg9[%c0_20, %c0_21], %29 {strides = array<i32>} : memref<2x128xf32, #tpu.memory_space<vmem>>, vector<2x128xf32>,
    return
  }
  func.func @transform_0(%arg0: i32) -> (i32, i32) {
    %c0_i32 = arith.constant 0 : i32
    %c0_i32_0 = arith.constant 0 : i32
    return %arg0, %c0_i32 : i32, i32
  }
  func.func @transform_1(%arg0: i32) -> (i32, i32) {
    %c0_i32 = arith.constant 0 : i32
    %c0_i32_0 = arith.constant 0 : i32
    %c0_i32_1 = arith.constant 0 : i32
    return %c0_i32, %c0_i32_0 : i32, i32
  }
  func.func @transform_2(%arg0: i32) -> (i32, i32) {
    %c0_i32 = arith.constant 0 : i32
    %c0_i32_0 = arith.constant 0 : i32
    %c0_i32_1 = arith.constant 0 : i32
    return %c0_i32, %c0_i32_0 : i32, i32
  }
  func.func @transform_3(%arg0: i32) -> (i32, i32) {
    %c0_i32 = arith.constant 0 : i32
    %c0_i32_0 = arith.constant 0 : i32
    %c0_i32_1 = arith.constant 0 : i32
    return %c0_i32, %c0_i32_0 : i32, i32
  }
  func.func @transform_4(%arg0: i32) -> (i32, i32) {
    %c0_i32 = arith.constant 0 : i32
    %c0_i32_0 = arith.constant 0 : i32
    %c0_i32_1 = arith.constant 0 : i32
    return %c0_i32, %c0_i32_0 : i32, i32
  }
  func.func @transform_5(%arg0: i32) -> (i32, i32) {
    %c0_i32 = arith.constant 0 : i32
    %c0_i32_0 = arith.constant 0 : i32
    %c0_i32_1 = arith.constant 0 : i32
    return %c0_i32, %c0_i32_0 : i32, i32
  }
  func.func @transform_6(%arg0: i32) -> (i32, i32) {
    %c0_i32 = arith.constant 0 : i32
    %c0_i32_0 = arith.constant 0 : i32
    %c0_i32_1 = arith.constant 0 : i32
    return %c0_i32, %c0_i32_0 : i32, i32
  }
  func.func @transform_7(%arg0: i32) -> (i32, i32) {
    %c0_i32 = arith.constant 0 : i32
    %c0_i32_0 = arith.constant 0 : i32
    %c0_i32_1 = arith.constant 0 : i32
    return %c0_i32, %c0_i32_0 : i32, i32
  }
  func.func @transform_8(%arg0: i32) -> (i32, i32) {
    %c0_i32 = arith.constant 0 : i32
    %c0_i32_0 = arith.constant 0 : i32
    return %arg0, %c0_i32 : i32, i32
  }
}

</mosaic_0001>

<bundles_post_ra>
// kernel: aux_block_forward.1
= control target key start
LH: loop header
LB: loop body
LE: loop exit
PB: predicated region body
PF: predicated region fallthrough
CT: control target
= control target key end

     0   :  { %13 = vsyncpa [#allocation3], 0  ;;  %s3305_s0 = inlined_call_operand.vmem [shape: f32[16,196], index: 0, kind: input, shape index: {}]   ;;  %s3306_s1 = inlined_call_operand.vmem [shape: bf16[196,16], index: 1, kind: input, shape index: {}]   ;;  %s3307_s2 = inlined_call_operand.hbm [shape: bf16[8,128], index: 2, kind: input, shape index: {}]   ;;  %s3308_s3 = inlined_call_operand.hbm [shape: f32[1,128], index: 3, kind: input, shape index: {}]   ;;  %s3309_s4 = inlined_call_operand.vmem [shape: bf16[2048,128], index: 4, kind: input, shape index: {}]   ;;  %s3310_s5 = inlined_call_operand.hbm [shape: f32[1,128], index: 5, kind: input, shape index: {}]   ;;  %s3311_s6 = inlined_call_operand.hbm [shape: bf16[128,128], index: 6, kind: input, shape index: {}]   ;;  %s3312_s7 = inlined_call_operand.hbm [shape: f32[1,128], index: 7, kind: input, shape index: {}]   ;;  %s3313_s8 = inlined_call_operand.hbm [shape: f32[2,128], index: 8, kind: output, shape index: {}]  }
   0x1   :  { %14 = vsyncpa [#allocation6], 0 }
   0x2   :  { %15 = vsyncpa [#allocation9], 0 }
   0x3   :  { %16 = vsyncpa [#allocation4], 0  ;;  %s2675_s27 = smov [#allocation5]   ;;  %s2676_s29 = smov [#allocation8]  }
   0x4   :  { %s37_s28 = sshll.u32 %s2675_s27, 4  ;;  %s58_s30 = sshll.u32 %s2676_s29, 4  ;;  %s38_s28 = int_to_ptr.vmem [resolvable:$true] %s37_s28  ;;  %s2732_s30 = int_to_ptr.vmem [resolvable:$true] %s58_s30 }
   0x5   :  { %s2535_s11 = scalar_lea.hbm %s3308_s3, 16 }
   0x6   :  { %p2536_p0 = scmp.ne.s32.totalorder %s3308_s3, %s2535_s11  ;;  %p2539_p1 = scmp.lt.u32.totalorder %s2535_s11, %s3308_s3 }
   0x8   :  { %p2541_p2 = pnand %p2539_p1, %p2536_p0 }
   0xa   :  { %2544 = shalt.err (!%p2541_p2)
}
   0xb   :  { %s2545_s16 = scalar_lea.vmem %s38_s28, 16  ;;  %s2549_s17 = scalar_lea.vmem %s38_s28, 32 }
   0xc   :  { %p2546_p3 = scmp.ne.s32.totalorder %s38_s28, %s2545_s16  ;;  %p2550_p4 = scmp.lt.s32.totalorder %s38_s28, %s38_s28 }
   0xd   :  { %p2551_p5 = scmp.lt.s32.totalorder %s2549_s17, %s2545_s16 }
   0xf   :  { %p2552_p6 = por %p2551_p5, %p2550_p4 }
  0x11   :  { %p2553_p7 = pnand %p2552_p6, %p2546_p3 }
  0x13   :  { %2556 = shalt.err (!%p2553_p7)
}
  0x14   :  { %40 = dma.hbm_to_vmem [thread:$0]  %s3308_s3, 16, %s38_s28, [#allocation6]  }
  0x15   :  { %s2557_s22 = scalar_lea.hbm %s3311_s6, 1024 }
  0x16   :  { %p2558_p8 = scmp.ne.s32.totalorder %s3311_s6, %s2557_s22  ;;  %p2561_p9 = scmp.lt.u32.totalorder %s2557_s22, %s3311_s6 }
  0x18   :  { %p2563_p10 = pnand %p2561_p9, %p2558_p8 }
  0x1a   :  { %2566 = shalt.err (!%p2563_p10)
}
  0x1b   :  { %s2567_s27 = scalar_lea.vmem %s2732_s30, 1024  ;;  %p2572_p12 = scmp.lt.s32.totalorder %s2732_s30, %s2732_s30 }
  0x1c   :  { %p2568_p11 = scmp.ne.s32.totalorder %s2732_s30, %s2567_s27  ;;  %p2573_p13 = scmp.lt.s32.totalorder %s2567_s27, %s2567_s27 }
  0x1e   :  { %p2574_p0 = por %p2573_p13, %p2572_p12 }
  0x20   :  { %p2575_p1 = pnand %p2574_p0, %p2568_p11 }
  0x22   :  { %2578 = shalt.err (!%p2575_p1)
}
  0x23   :  { %s2677_s3 = smov 64   ;;  %s2678_s28 = smov 4  }
  0x24   :  { %64 = dma.hbm_to_vmem [thread:$0]  %s3311_s6, 1024, %s2732_s30, [#allocation9], %s2677_s3, %s2677_s3, %s2678_s28  }
  0x25   :  { %s2679_s10 = smov [#allocation2]   ;;  %s2680_s12 = smov [#allocation7]  }
  0x26   :  { %s27_s11 = sshll.u32 %s2679_s10, 4  ;;  %s49_s13 = sshll.u32 %s2680_s12, 4  ;;  %s28_s11 = int_to_ptr.vmem [resolvable:$true] %s27_s11  ;;  %s50_s13 = int_to_ptr.vmem [resolvable:$true] %s49_s13 }
  0x27   :  { %s2579_s16 = scalar_lea.hbm %s3307_s2, 64 }
  0x28   :  { %p2580_p2 = scmp.ne.s32.totalorder %s3307_s2, %s2579_s16  ;;  %p2583_p3 = scmp.lt.u32.totalorder %s2579_s16, %s3307_s2 }
  0x2a   :  { %p2585_p4 = pnand %p2583_p3, %p2580_p2 }
  0x2c   :  { %2588 = shalt.err (!%p2585_p4)
}
  0x2d   :  { %s2589_s6 = scalar_lea.vmem %s28_s11, 64  ;;  %p2594_p6 = scmp.lt.s32.totalorder %s28_s11, %s28_s11 }
  0x2e   :  { %p2590_p5 = scmp.ne.s32.totalorder %s28_s11, %s2589_s6  ;;  %p2595_p7 = scmp.lt.s32.totalorder %s2589_s6, %s2589_s6 }
  0x30   :  { %p2596_p8 = por %p2595_p7, %p2594_p6 }
  0x32   :  { %p2597_p9 = pnand %p2596_p8, %p2590_p5 }
  0x34   :  { %2600 = shalt.err (!%p2597_p9)
}
  0x35   :  { %30 = dma.hbm_to_vmem [thread:$0]  %s3307_s2, 64, %s28_s11, [#allocation3]  }
  0x36   :  { %s2601_s24 = scalar_lea.hbm %s3310_s5, 16 }
  0x37   :  { %p2602_p10 = scmp.ne.s32.totalorder %s3310_s5, %s2601_s24  ;;  %p2605_p11 = scmp.lt.u32.totalorder %s2601_s24, %s3310_s5 }
  0x39   :  { %p2607_p12 = pnand %p2605_p11, %p2602_p10 }
  0x3b   :  { %2610 = shalt.err (!%p2607_p12)
}
  0x3c   :  { %s2611_s28 = scalar_lea.vmem %s50_s13, 16  ;;  %s2615_s29 = scalar_lea.vmem %s50_s13, 32 }
  0x3d   :  { %p2612_p13 = scmp.ne.s32.totalorder %s50_s13, %s2611_s28  ;;  %p2616_p0 = scmp.lt.s32.totalorder %s50_s13, %s50_s13 }
  0x3e   :  { %p2617_p1 = scmp.lt.s32.totalorder %s2615_s29, %s2611_s28 }
  0x40   :  { %p2618_p2 = por %p2617_p1, %p2616_p0 }
  0x42   :  { %p2619_p3 = pnand %p2618_p2, %p2612_p13 }
  0x44   :  { %2622 = shalt.err (!%p2619_p3)
}
  0x45   :  { %52 = dma.hbm_to_vmem [thread:$0]  %s3310_s5, 16, %s50_s13, [#allocation6]  }
  0x46   :  { %s2681_s10 = smov [#allocation10]   ;;  %s2623_s15 = scalar_lea.hbm %s3312_s7, 16 }
  0x47   :  { %s71_s11 = sshll.u32 %s2681_s10, 4  ;;  %p2624_p4 = scmp.ne.s32.totalorder %s3312_s7, %s2623_s15  ;;  %s72_s11 = int_to_ptr.vmem [resolvable:$true] %s71_s11 }
  0x48   :  { %p2627_p5 = scmp.lt.u32.totalorder %s2623_s15, %s3312_s7 }
  0x4a   :  { %p2629_p6 = pnand %p2627_p5, %p2624_p4 }
  0x4c   :  { %2632 = shalt.err (!%p2629_p6)
}
  0x4d   :  { %s2633_s20 = scalar_lea.vmem %s72_s11, 16  ;;  %s2637_s5 = scalar_lea.vmem %s72_s11, 32 }
  0x4e   :  { %p2634_p7 = scmp.ne.s32.totalorder %s72_s11, %s2633_s20  ;;  %p2638_p8 = scmp.lt.s32.totalorder %s72_s11, %s72_s11 }
  0x4f   :  { %p2639_p9 = scmp.lt.s32.totalorder %s2637_s5, %s2633_s20 }
  0x51   :  { %p2640_p10 = por %p2639_p9, %p2638_p8 }
  0x53   :  { %p2641_p11 = pnand %p2640_p10, %p2634_p7 }
  0x55   :  { %2644 = shalt.err (!%p2641_p11)
}
  0x56   :  { %74 = dma.hbm_to_vmem [thread:$0]  %s3312_s7, 16, %s72_s11, [#allocation9]  }
  0x57   :  { %2667 = dma.done.wait [#allocation3], 64  }
  0x58   :  { %2668 = vsyncadd [#allocation3], 4294967232 }
  0x59   :  { %2669 = dma.done.wait [#allocation6], 32  }
  0x5a   :  { %2670 = vsyncadd [#allocation6], 4294967264 }
  0x5b   :  { %2671 = dma.done.wait [#allocation9], 1040  }
  0x5c   :  { %2672 = vsyncadd [#allocation9], 4294966256  ;;  %v2682_v0 = vmov 0   ;;  %v2386_v1 = vld [vmem:[%s3306_s1] sm:$0xff]   ;;  %v2387_v2 = vld [vmem:[%s3306_s1 + $0x8] sm:$0xff]   ;;  %vm201_vm0 = vcmask 1041408  }
  0x5d   :  { %205 = vmatprep.subr.bf16.mxu0 %v2682_v0  ;;  %v2388_v3 = vld [vmem:[%s3306_s1 + $0x10] sm:$0xff]   ;;  %v2389_v4 = vld [vmem:[%s3306_s1 + $0x18] sm:$0xff]   ;;  %v2398_v5 = vld [vmem:[%s3306_s1 + $0x60] ss:$0 sps:$4 sm:$0x33]   ;;  %vm197_vm1 = vcmask 556032  }
  0x5e   :  { %206 = vmatpush1.bf16.msra.mxu0 %v2386_v1  ;;  %v92_v6 = vld [vmem:[%s3305_s0 + $0x8] sm:$0xff]  ;;  %v94_v7 = vld [vmem:[%s3305_s0 + $0x18] sm:$0xff]  ;;  %v2390_v8 = vld [vmem:[%s3306_s1 + $0x20] sm:$0xff]   ;;  %v203_v9 = vsel %vm201_vm0, %v2398_v5, 0  ;;  %vm327_vm2 = vcmask 1043456   ;;  %vm320_vm3 = vcmask 64512  }
  0x5f   :  { %207 = vmatprep.subr.bf16.mxu0 %v2682_v0  ;;  %v96_v10 = vpack.c.bf16 %v94_v7, %v92_v6  ;;  %v2391_v11 = vld [vmem:[%s3306_s1 + $0x28] sm:$0xff]   ;;  %v2392_v12 = vld [vmem:[%s3306_s1 + $0x30] sm:$0xff]   ;;  %v2393_v13 = vld [vmem:[%s3306_s1 + $0x38] sm:$0xff]   ;;  %v2683_v6 = vmov 1966171168   ;;  %vm2685_vm4 = vmmov 0  }
  0x60   :  { %v2394_v14 = vld [vmem:[%s3306_s1 + $0x40] sm:$0xff]   ;;  %v2395_v15 = vld [vmem:[%s3306_s1 + $0x48] sm:$0xff]   ;;  %v2396_v16 = vld [vmem:[%s3306_s1 + $0x50] sm:$0xff]   ;;  %v659_v7 = vunpack.c.l.s4 %v2683_v6 }
  0x61   :  { %2003 = vmatprep.mubr.msk.bf16.mxu0 %vm197_vm1, %v96_v10  ;;  %v2397_v17 = vld [vmem:[%s3306_s1 + $0x58] sm:$0xff]   ;;  %v91_v18 = vld [vmem:[%s3305_s0] sm:$0xff]  ;;  %v93_v19 = vld [vmem:[%s3305_s0 + $0x10] sm:$0xff] }
  0x62   :  { %208 = vmatpush1.bf16.msra.mxu0 %v2387_v2  ;;  %v95_v20 = vpack.c.bf16 %v93_v19, %v91_v18  ;;  %v312_v26 = vld [vmem:[#allocation2] sm:$0xf]  ;;  %v2405_v31 = vld [vmem:[%s3309_s4 + $0x148] sm:$0xff]   ;;  %v2409_v33 = vld [vmem:[%s3309_s4 + $0x150] sm:$0xff]  }
  0x63   :  { %209 = vmatprep.subr.bf16.mxu0 %v2682_v0  ;;  %2361 = vmatprep.subr.msk.bf16.mxu1 %vm327_vm2, %v312_v26  ;;  %v329_v27 = vsel %vm327_vm2, %v312_v26, 0  ;;  %v2399_v28 = vld [vmem:[%s3309_s4 + $0x40] sm:$0xff]   ;;  %v2406_v32 = vld [vmem:[%s3309_s4 + $0x108] sm:$0xff]   ;;  %v2410_v34 = vld [vmem:[%s3309_s4 + $0x110] sm:$0xff]  }
  0x64   :  { %2336 = vmatpush3.bf16.msra.mxu1 %v329_v27  ;;  %v2401_v29 = vld [vmem:[%s3309_s4 + $0x140] sm:$0xff]   ;;  %v2413_v35 = vld [vmem:[%s3309_s4 + $0x158] sm:$0xff]   ;;  %v2403_v46 = vld [vmem:[%s3309_s4 + $0x48] sm:$0xff]  }
  0x65   :  { %v2402_v30 = vld [vmem:[%s3309_s4 + $0x100] sm:$0xff]   ;;  %2150 = vmatprep.subr.bf16.mxu1 %v2399_v28  ;;  %v2414_v36 = vld [vmem:[%s3309_s4 + $0x118] sm:$0xff]   ;;  %v2404_v47 = vld [vmem:[%s3309_s4 + $0x8] sm:$0xff]  }
  0x66   :  { %210 = vmatpush1.bf16.msra.mxu0 %v2388_v3  ;;  %v2400_v45 = vld [vmem:[%s3309_s4] sm:$0xff]   ;;  %v2407_v48 = vld [vmem:[%s3309_s4 + $0x50] sm:$0xff]   ;;  %v2411_v50 = vld [vmem:[%s3309_s4 + $0x58] sm:$0xff]  }
  0x67   :  { %211 = vmatprep.subr.bf16.mxu0 %v2682_v0  ;;  %v2408_v49 = vld [vmem:[%s3309_s4 + $0x10] sm:$0xff]   ;;  %v2412_v51 = vld [vmem:[%s3309_s4 + $0x18] sm:$0xff]   ;;  %v2415_v52 = vld [vmem:[%s3309_s4 + $0x60] sm:$0xff]  }
  0x68   :  { %v2416_v53 = vld [vmem:[%s3309_s4 + $0x20] sm:$0xff]   ;;  %v2419_v56 = vld [vmem:[%s3309_s4 + $0x68] sm:$0xff]   ;;  %v2423_v60 = vld [vmem:[%s3309_s4 + $0x70] sm:$0xff]  }
  0x69   :  { %v2417_v54 = vld [vmem:[%s3309_s4 + $0x160] sm:$0xff]   ;;  %v2420_v57 = vld [vmem:[%s3309_s4 + $0x28] sm:$0xff]   ;;  %v2424_v61 = vld [vmem:[%s3309_s4 + $0x30] sm:$0xff]  }
  0x6a   :  { %212 = vmatpush1.bf16.msra.mxu0 %v2389_v4  ;;  %v2418_v55 = vld [vmem:[%s3309_s4 + $0x120] sm:$0xff]   ;;  %v2421_v58 = vld [vmem:[%s3309_s4 + $0x168] sm:$0xff]   ;;  %v2425_v62 = vld [vmem:[%s3309_s4 + $0x170] sm:$0xff]  }
  0x6b   :  { %213 = vmatprep.subr.bf16.mxu0 %v2682_v0  ;;  %v2422_v59 = vld [vmem:[%s3309_s4 + $0x128] sm:$0xff]   ;;  %v2426_v63 = vld [vmem:[%s3309_s4 + $0x130] sm:$0xff]   ;;  %v2428_v1 = vld [vmem:[%s3309_s4 + $0x38] sm:$0xff]  }
  0x6c   :  { %v2429_v2 = vld [vmem:[%s3309_s4 + $0x178] sm:$0xff]   ;;  %v2431_v4 = vld [vmem:[%s3309_s4 + $0xc0] sm:$0xff]  }
  0x6d   :  { %v2430_v3 = vld [vmem:[%s3309_s4 + $0x138] sm:$0xff]   ;;  %v2433_v5 = vld [vmem:[%s3309_s4 + $0x240] sm:$0xff]  }
  0x6e   :  { %214 = vmatpush1.bf16.msra.mxu0 %v2390_v8  ;;  %v661_v8 = vlaneseq  ;;  %v2461_v6 = vld [vmem:[%s3309_s4 + $0x278] sm:$0xff]  }
  0x6f   :  { %215 = vmatprep.subr.bf16.mxu0 %v2682_v0 }
  0x72   :  { %216 = vmatpush1.bf16.msra.mxu0 %v2391_v11  ;;  %v660_v11 = vunpack.c.0.s8 %v659_v7  ;;  %v2460_v7 = vld [vmem:[%s3309_s4 + $0xb8] sm:$0xff]  }
  0x73   :  { %217 = vmatprep.subr.bf16.mxu0 %v2682_v0 }
  0x76   :  { %218 = vmatpush1.bf16.msra.mxu0 %v2392_v12  ;;  %v662_v12 = vshrl.u32 %v661_v8, 7  ;;  %v2463_v8 = vld [vmem:[%s3309_s4 + $0x1c0] sm:$0xff]  }
  0x77   :  { %219 = vmatprep.subr.bf16.mxu0 %v2682_v0 }
  0x7a   :  { %220 = vmatpush1.bf16.msra.mxu0 %v2393_v13 }
  0x7b   :  { %221 = vmatprep.subr.bf16.mxu0 %v2682_v0 }
  0x7e   :  { %222 = vmatpush1.bf16.msra.mxu0 %v2394_v14 }
  0x7f   :  { %223 = vmatprep.subr.bf16.mxu0 %v2682_v0 }
  0x82   :  { %224 = vmatpush1.bf16.msra.mxu0 %v2395_v15 }
  0x83   :  { %225 = vmatprep.subr.bf16.mxu0 %v2682_v0 }
  0x86   :  { %226 = vmatpush1.bf16.msra.mxu0 %v2396_v16 }
  0x87   :  { %227 = vmatprep.subr.bf16.mxu0 %v2682_v0 }
  0x8a   :  { %228 = vmatpush1.bf16.msra.mxu0 %v2397_v17 }
  0x8b   :  { %229 = vmatprep.subr.bf16.mxu0 %v2682_v0  ;;  %v2427_v0 = vld [vmem:[%s3309_s4 + $0x78] sm:$0xff]  }
  0x8e   :  { %230 = vmatpush1.bf16.msra.mxu0 %v203_v9  ;;  %v2004_v9 = vld [vmem:[#allocation5] ss:$0 sm:$0xff] }
  0x8f   :  { %2194 = vmatprep.subr.bf16.mxu0 %v2401_v29 }
  0x91   :  { %238 = vmatmul.mubr.bf16.vlgmr.msra.gmra.mrb[0].mxu0 %v95_v20 }
  0x92   :  { %2195 = vmatpush3.bf16.msra.mxu0 %v2402_v30 }
  0x93   :  { %2196 = vmatprep.subr.bf16.mxu0 %v2405_v31 }
  0x96   :  { %2197 = vmatpush3.bf16.msra.mxu0 %v2406_v32 }
  0x97   :  { %2198 = vmatprep.subr.bf16.mxu0 %v2409_v33 }
  0x9a   :  { %2199 = vmatpush3.bf16.msra.mxu0 %v2410_v34 }
  0x9b   :  { %2200 = vmatprep.subr.bf16.mxu0 %v2413_v35 }
  0x9e   :  { %2201 = vmatpush3.bf16.msra.mxu0 %v2414_v36  ;;  %v2432_v36 = vld [vmem:[%s3309_s4 + $0x80] sm:$0xff]  }
  0x9f   :  { %2202 = vmatprep.subr.bf16.mxu0 %v2417_v54  ;;  %v2445_v54 = vld [vmem:[%s3309_s4 + $0x258] sm:$0xff]  }
  0xa2   :  { %2203 = vmatpush3.bf16.msra.mxu0 %v2418_v55  ;;  %v2444_v55 = vld [vmem:[%s3309_s4 + $0x98] sm:$0xff]  }
  0xa3   :  { %2204 = vmatprep.subr.bf16.mxu0 %v2421_v58  ;;  %v2449_v58 = vld [vmem:[%s3309_s4 + $0x260] sm:$0xff]  }
  0xa6   :  { %2205 = vmatpush3.bf16.msra.mxu0 %v2422_v59  ;;  %v2448_v59 = vld [vmem:[%s3309_s4 + $0xa0] sm:$0xff]  }
  0xa7   :  { %2206 = vmatprep.subr.bf16.mxu0 %v2425_v62  ;;  %v2453_v62 = vld [vmem:[%s3309_s4 + $0x268] sm:$0xff]  }
  0xaa   :  { %2207 = vmatpush3.bf16.msra.mxu0 %v2426_v63  ;;  %v2452_v63 = vld [vmem:[%s3309_s4 + $0xa8] sm:$0xff]  }
  0xab   :  { %2208 = vmatprep.subr.bf16.mxu0 %v2429_v2  ;;  %v2457_v2 = vld [vmem:[%s3309_s4 + $0x270] sm:$0xff]  }
  0xae   :  { %2209 = vmatpush3.bf16.msra.mxu0 %v2430_v3  ;;  %v2456_v3 = vld [vmem:[%s3309_s4 + $0xb0] sm:$0xff]  }
  0xaf   :  { %2238 = vmatprep.subr.bf16.mxu0 %v2433_v5  ;;  %v2458_v5 = vld [vmem:[%s3309_s4 + $0x230] sm:$0xff]  }
 0x164   :  { %v239_v21 = vpop.f32.mrb[0].mxu0 }
 0x165   :  { %v241_v22 = vpop.f32.mrb[1].mxu0 }
 0x166   :  { %v242_v23 = vpop.f32.mrb[2].mxu0 }
 0x167   :  { %v244_v24 = vpop.f32.mrb[3].mxu0  ;;  %v2374_v25 = vpack.i.bf16 %v242_v23, %v239_v21  ;;  %v2952_v21 = vsub.s32 %v660_v11, %v662_v12  ;;  %v2464_v11 = vld [vmem:[%s3309_s4 + $0x180] sm:$0xff]  }
 0x169   :  { %2375 = vxpose.xlu0.b32.start.end [1/1] (short) (narrow) %v2374_v25, 16 }
 0x1e9   :  { %v2376_v37 = vpop.trf.xlu0 }
 0x1ea   :  { %v2380_v38 = vunpack.i.h.bf16 %v2376_v37  ;;  %v2377_v40 = vunpack.i.l.bf16 %v2376_v37 }
 0x1ed   :  { %v2381_v39 = vpop.trf.xlu0 }
 0x1ee   :  { %v2385_v41 = vunpack.i.h.bf16 %v2381_v39  ;;  %v2382_v42 = vunpack.i.l.bf16 %v2381_v39 }
 0x1f0   :  { %v311_v43 = vpack.c.bf16 %v2385_v41, %v2380_v38  ;;  %v310_v44 = vpack.c.bf16 %v2382_v42, %v2377_v40  ;;  %v2435_v40 = vld [vmem:[%s3309_s4 + $0xc8] sm:$0xff]  }
 0x1f2   :  { %2337 = vmatprep.mubr.msk.bf16.mxu1 %vm320_vm3, %v310_v44 }
 0x1f3   :  { %2338 = vmatmul.mubr.msk.bf16.vlgmr.msra.gmra.mrb[0].mxu1 %vm320_vm3, %v311_v43  ;;  %v2434_v43 = vld [vmem:[%s3309_s4 + $0x200] sm:$0xff]  }
 0x1f4   :  { %2151 = vmatpush3.bf16.msra.mxu1 %v2400_v45  ;;  %v2437_v45 = vld [vmem:[%s3309_s4 + $0x248] sm:$0xff]  }
 0x1f5   :  { %2152 = vmatprep.subr.bf16.mxu1 %v2403_v46 }
 0x1f8   :  { %2153 = vmatpush3.bf16.msra.mxu1 %v2404_v47  ;;  %v2436_v47 = vld [vmem:[%s3309_s4 + $0x88] sm:$0xff]  }
 0x1f9   :  { %2154 = vmatprep.subr.bf16.mxu1 %v2407_v48  ;;  %v2439_v48 = vld [vmem:[%s3309_s4 + $0xd0] sm:$0xff]  }
 0x1fc   :  { %2155 = vmatpush3.bf16.msra.mxu1 %v2408_v49  ;;  %v2438_v49 = vld [vmem:[%s3309_s4 + $0x208] sm:$0xff]  }
 0x1fd   :  { %2156 = vmatprep.subr.bf16.mxu1 %v2411_v50  ;;  %v2441_v50 = vld [vmem:[%s3309_s4 + $0x250] sm:$0xff]  }
 0x200   :  { %2157 = vmatpush3.bf16.msra.mxu1 %v2412_v51  ;;  %v2440_v51 = vld [vmem:[%s3309_s4 + $0x90] sm:$0xff]  }
 0x201   :  { %2158 = vmatprep.subr.bf16.mxu1 %v2415_v52  ;;  %v2443_v52 = vld [vmem:[%s3309_s4 + $0xd8] sm:$0xff]  }
 0x204   :  { %2159 = vmatpush3.bf16.msra.mxu1 %v2416_v53  ;;  %v2442_v53 = vld [vmem:[%s3309_s4 + $0x210] sm:$0xff]  }
 0x205   :  { %2160 = vmatprep.subr.bf16.mxu1 %v2419_v56  ;;  %v2447_v56 = vld [vmem:[%s3309_s4 + $0xe0] sm:$0xff]  }
 0x208   :  { %2161 = vmatpush3.bf16.msra.mxu1 %v2420_v57  ;;  %v2446_v57 = vld [vmem:[%s3309_s4 + $0x218] sm:$0xff]  }
 0x209   :  { %2162 = vmatprep.subr.bf16.mxu1 %v2423_v60  ;;  %v2451_v60 = vld [vmem:[%s3309_s4 + $0xe8] sm:$0xff]  }
 0x20c   :  { %2163 = vmatpush3.bf16.msra.mxu1 %v2424_v61  ;;  %v2450_v61 = vld [vmem:[%s3309_s4 + $0x220] sm:$0xff]  }
 0x20d   :  { %2164 = vmatprep.subr.bf16.mxu1 %v2427_v0  ;;  %v2455_v0 = vld [vmem:[%s3309_s4 + $0xf0] sm:$0xff]  }
 0x210   :  { %2165 = vmatpush3.bf16.msra.mxu1 %v2428_v1  ;;  %v2454_v1 = vld [vmem:[%s3309_s4 + $0x228] sm:$0xff]  }
 0x211   :  { %2172 = vmatprep.subr.bf16.mxu1 %v2431_v4  ;;  %v2459_v4 = vld [vmem:[%s3309_s4 + $0xf8] sm:$0xff]  }
 0x2c6   :  { %v2339_v10 = vpop.f32.mrb[0].mxu1 }
 0x2c7   :  { %v374_v13 = vadd.f32 %v2339_v10, %v2004_v9  ;;  %v365_v14 = vpop.f32.mrb[1].mxu1  ;;  %v2465_v10 = vld [vmem:[%s3309_s4 + $0x340] sm:$0xff]  }
 0x2c8   :  { %v366_v15 = vadd.f32 %v2004_v9, %v365_v14  ;;  %v2340_v16 = vpop.f32.mrb[2].mxu1  ;;  %v2467_v14 = vld [vmem:[%s3309_s4 + $0x1c8] sm:$0xff]  }
 0x2c9   :  { %v382_v17 = vmax.f32 %v374_v13, 0.0  ;;  %v377_v18 = vadd.f32 %v2340_v16, %v2004_v9  ;;  %v368_v19 = vpop.f32.mrb[3].mxu1  ;;  %v2466_v16 = vld [vmem:[%s3309_s4 + $0x300] sm:$0xff]  }
 0x2ca   :  { %v380_v20 = vmax.f32 %v366_v15, 0.0  ;;  %v369_v22 = vadd.f32 %v2004_v9, %v368_v19  ;;  %v2462_v9 = vld [vmem:[%s3309_s4 + $0x238] sm:$0xff]  }
 0x2cb   :  { %v383_v23 = vmax.f32 %v377_v18, 0.0  ;;  %v2469_v18 = vld [vmem:[%s3309_s4 + $0x348] sm:$0xff]  }
 0x2cc   :  { %v2008_v24 = vpack.i.bf16 %v382_v17, %v380_v20  ;;  %v381_v25 = vmax.f32 %v369_v22, 0.0  ;;  %v2468_v20 = vld [vmem:[%s3309_s4 + $0x188] sm:$0xff]   ;;  %v2471_v22 = vld [vmem:[%s3309_s4 + $0x1d0] sm:$0xff]  }
 0x2ce   :  { %v657_v26 = vcombine.high %v2008_v24, %v2008_v24  ;;  %v664_v27 = vrot.slane %v2008_v24, %v2952_v21  ;;  %v2009_v28 = vpack.i.bf16 %v383_v23, %v381_v25  ;;  %v2470_v23 = vld [vmem:[%s3309_s4 + $0x308] sm:$0xff]   ;;  %v2472_v24 = vld [vmem:[%s3309_s4 + $0x190] sm:$0xff]   ;;  %v2475_v25 = vld [vmem:[%s3309_s4 + $0x1d8] sm:$0xff]  }
 0x2d0   :  { %v671_v29 = vrot.slane %v657_v26, %v2952_v21  ;;  %v706_v30 = vcombine.high %v2009_v28, %v2009_v28  ;;  %v2957_v31 = vrot.slane %v2009_v28, %v2952_v21  ;;  %v672_v32 = vcombine.high %v664_v27, %v664_v27  ;;  %v2474_v26 = vld [vmem:[%s3309_s4 + $0x310] sm:$0xff]   ;;  %v2476_v28 = vld [vmem:[%s3309_s4 + $0x198] sm:$0xff]  }
 0x2d1   :  { %v2969_v38 = vrot.slane %v664_v27, %v2952_v21  ;;  %v2477_v27 = vld [vmem:[%s3309_s4 + $0x358] sm:$0xff]  }
 0x2d2   :  { %v2960_v33 = vrot.slane %v706_v30, %v2952_v21  ;;  %v673_v34 = vcombine.high %v671_v29, %v671_v29  ;;  %v694_v35 = vrot.slane %v672_v32, %v2952_v21  ;;  %v721_v37 = vcombine.high %v2957_v31, %v2957_v31  ;;  %v2478_v30 = vld [vmem:[%s3309_s4 + $0x318] sm:$0xff]   ;;  %v2480_v32 = vld [vmem:[%s3309_s4 + $0x1a0] sm:$0xff]  }
 0x2d3   :  { %v2987_v44 = vrot.slane %v671_v29, %v2952_v21  ;;  %v702_v13 = vcombine.high %v2969_v38, %v2969_v38  ;;  %v3098_v17 = vrot.slane %v2957_v31, %v2952_v21  ;;  %v2479_v29 = vld [vmem:[%s3309_s4 + $0x1e0] sm:$0xff]  }
 0x2d4   :  { %v2972_v39 = vrot.slane %v673_v34, %v2952_v21  ;;  %v2979_v41 = vrot.slane %v2960_v33, %v2952_v21  ;;  %1571 = vmatprep.mubr.bf16.mxu1 %v694_v35  ;;  %v704_v42 = vcombine.high %v694_v35, %v694_v35  ;;  %v2993_v46 = vrot.slane %v721_v37, %v2952_v21  ;;  %v2481_v31 = vld [vmem:[%s3309_s4 + $0x360] sm:$0xff]   ;;  %v2485_v35 = vld [vmem:[%s3309_s4 + $0x368] sm:$0xff]   ;;  %v2487_v37 = vld [vmem:[%s3309_s4 + $0x1f0] sm:$0xff]  }
 0x2d5   :  { %1572 = vmatmul.mubr.bf16.vlgmr.msra.gmra.mrb[4].mxu1 %v2969_v38  ;;  %v722_v12 = vcombine.high %v2960_v33, %v2960_v33  ;;  %v2483_v33 = vld [vmem:[%s3309_s4 + $0x1e8] sm:$0xff]   ;;  %v2482_v34 = vld [vmem:[%s3309_s4 + $0x320] sm:$0xff]  }
 0x2d6   :  { %1651 = vmatprep.mubr.bf16.mxu0 %v2972_v39  ;;  %2173 = vmatpush3.bf16.msra.mxu1 %v2432_v36  ;;  %v705_v15 = vcombine.high %v2972_v39, %v2972_v39  ;;  %v2484_v36 = vld [vmem:[%s3309_s4 + $0x1a8] sm:$0xff]   ;;  %v2489_v39 = vld [vmem:[%s3309_s4 + $0x370] sm:$0xff]  }
 0x2d7   :  { %1611 = vmatprep.mubr.bf16.mxu1 %v704_v42  ;;  %1652 = vmatmul.mubr.bf16.vlgmr.msra.gmra.mrb[4].mxu0 %v2987_v44  ;;  %v3104_v19 = vrot.slane %v722_v12, %v2952_v21  ;;  %v2473_v21 = vld [vmem:[%s3309_s4 + $0x350] sm:$0xff]   ;;  %v2486_v38 = vld [vmem:[%s3309_s4 + $0x328] sm:$0xff]   ;;  %v2491_v42 = vld [vmem:[%s3309_s4 + $0x1f8] sm:$0xff]  }
 0x2d8   :  { %2174 = vmatprep.subr.bf16.mxu1 %v2435_v40  ;;  %2239 = vmatpush3.bf16.msra.mxu0 %v2434_v43  ;;  %v2488_v40 = vld [vmem:[%s3309_s4 + $0x1b0] sm:$0xff]   ;;  %v2520_v12 = vld [vmem:[%s3309_s4 + $0x3a0] sm:$0xff]  }
 0x2d9   :  { %1731 = vmatprep.mubr.bf16.mxu0 %v2993_v46  ;;  %2240 = vmatprep.subr.bf16.mxu0 %v2437_v45  ;;  %v2490_v43 = vld [vmem:[%s3309_s4 + $0x330] sm:$0xff]   ;;  %v2493_v45 = vld [vmem:[%s3309_s4 + $0x378] sm:$0xff]  }
 0x2da   :  { %2175 = vmatpush3.bf16.msra.mxu1 %v2436_v47  ;;  %v2492_v47 = vld [vmem:[%s3309_s4 + $0x1b8] sm:$0xff]  }
 0x2db   :  { %2176 = vmatprep.subr.bf16.mxu1 %v2439_v48  ;;  %v2495_v48 = vld [vmem:[%s3309_s4 + $0x2c0] sm:$0xff]  }
 0x2dc   :  { %2241 = vmatpush3.bf16.msra.mxu0 %v2438_v49  ;;  %v2494_v49 = vld [vmem:[%s3309_s4 + $0x338] sm:$0xff]  }
 0x2dd   :  { %2242 = vmatprep.subr.bf16.mxu0 %v2441_v50  ;;  %v2496_v50 = vld [vmem:[%s3309_s4 + $0x280] sm:$0xff]  }
 0x2de   :  { %2177 = vmatpush3.bf16.msra.mxu1 %v2440_v51  ;;  %v703_v51 = vcombine.high %v2987_v44, %v2987_v44  ;;  %v2499_v44 = vld [vmem:[%s3309_s4 + $0x2d0] sm:$0xff]  }
 0x2df   :  { %2178 = vmatprep.subr.bf16.mxu1 %v2443_v52  ;;  %v2497_v52 = vld [vmem:[%s3309_s4 + $0x2c8] sm:$0xff]  }
 0x2e0   :  { %2243 = vmatpush3.bf16.msra.mxu0 %v2442_v53  ;;  %v753_v53 = vcombine.high %v2993_v46, %v2993_v46  ;;  %v2501_v46 = vld [vmem:[%s3309_s4 + $0x2d8] sm:$0xff]  }
 0x2e1   :  { %2244 = vmatprep.subr.bf16.mxu0 %v2445_v54  ;;  %v2498_v54 = vld [vmem:[%s3309_s4 + $0x288] sm:$0xff]  }
 0x2e2   :  { %2179 = vmatpush3.bf16.msra.mxu1 %v2444_v55  ;;  %v2500_v55 = vld [vmem:[%s3309_s4 + $0x290] sm:$0xff]  }
 0x2e3   :  { %2180 = vmatprep.subr.bf16.mxu1 %v2447_v56  ;;  %v2502_v56 = vld [vmem:[%s3309_s4 + $0x298] sm:$0xff]  }
 0x2e4   :  { %2245 = vmatpush3.bf16.msra.mxu0 %v2446_v57  ;;  %v2503_v57 = vld [vmem:[%s3309_s4 + $0x2e0] sm:$0xff]  }
 0x2e5   :  { %2246 = vmatprep.subr.bf16.mxu0 %v2449_v58  ;;  %v2504_v58 = vld [vmem:[%s3309_s4 + $0x2a0] sm:$0xff]  }
 0x2e6   :  { %2181 = vmatpush3.bf16.msra.mxu1 %v2448_v59  ;;  %v2505_v59 = vld [vmem:[%s3309_s4 + $0x2e8] sm:$0xff]  }
 0x2e7   :  { %2182 = vmatprep.subr.bf16.mxu1 %v2451_v60  ;;  %v2506_v60 = vld [vmem:[%s3309_s4 + $0x2a8] sm:$0xff]  }
 0x2e8   :  { %2247 = vmatpush3.bf16.msra.mxu0 %v2450_v61  ;;  %v2507_v61 = vld [vmem:[%s3309_s4 + $0x2f0] sm:$0xff]  }
 0x2e9   :  { %2248 = vmatprep.subr.bf16.mxu0 %v2453_v62  ;;  %v2508_v62 = vld [vmem:[%s3309_s4 + $0x2b0] sm:$0xff]  }
 0x2ea   :  { %2183 = vmatpush3.bf16.msra.mxu1 %v2452_v63  ;;  %v2509_v63 = vld [vmem:[%s3309_s4 + $0x2f8] sm:$0xff]  }
 0x2eb   :  { %2184 = vmatprep.subr.bf16.mxu1 %v2455_v0  ;;  %v2510_v0 = vld [vmem:[%s3309_s4 + $0x2b8] sm:$0xff]  }
 0x2ec   :  { %2249 = vmatpush3.bf16.msra.mxu0 %v2454_v1  ;;  %v2511_v1 = vld [vmem:[%s3309_s4 + $0x3c0] sm:$0xff]  }
 0x2ed   :  { %2250 = vmatprep.subr.bf16.mxu0 %v2457_v2  ;;  %v2512_v2 = vld [vmem:[%s3309_s4 + $0x380] sm:$0xff]  }
 0x2ee   :  { %2185 = vmatpush3.bf16.msra.mxu1 %v2456_v3  ;;  %v751_v3 = vcombine.high %v3098_v17, %v3098_v17 }
 0x2ef   :  { %2186 = vmatprep.subr.bf16.mxu1 %v2459_v4  ;;  %v2513_v4 = vld [vmem:[%s3309_s4 + $0x3c8] sm:$0xff]  }
 0x2f0   :  { %2251 = vmatpush3.bf16.msra.mxu0 %v2458_v5  ;;  %v754_v5 = vcombine.high %v3104_v19, %v3104_v19 }
 0x2f1   :  { %2252 = vmatprep.subr.bf16.mxu0 %v2461_v6  ;;  %v2514_v6 = vld [vmem:[%s3309_s4 + $0x388] sm:$0xff]  }
 0x2f2   :  { %2187 = vmatpush3.bf16.msra.mxu1 %v2460_v7  ;;  %v2515_v7 = vld [vmem:[%s3309_s4 + $0x3d0] sm:$0xff]  }
 0x2f3   :  { %2216 = vmatprep.subr.bf16.mxu1 %v2463_v8  ;;  %v2516_v8 = vld [vmem:[%s3309_s4 + $0x390] sm:$0xff]  }
 0x2f4   :  { %2253 = vmatpush3.bf16.msra.mxu0 %v2462_v9  ;;  %v2517_v9 = vld [vmem:[%s3309_s4 + $0x3d8] sm:$0xff]  }
 0x2f5   :  { %1612 = vmatmul.mubr.bf16.vlgmr.msra.gmra.mrb[8].mxu1 %v702_v13  ;;  %2282 = vmatprep.subr.bf16.mxu0 %v2465_v10  ;;  %v2518_v10 = vld [vmem:[%s3309_s4 + $0x398] sm:$0xff]   ;;  %v2521_v13 = vld [vmem:[%s3309_s4 + $0x3e8] sm:$0xff]  }
 0x2f6   :  { %2217 = vmatpush3.bf16.msra.mxu1 %v2464_v11  ;;  %1691 = vmatprep.mubr.bf16.mxu1 %v705_v15  ;;  %v2519_v11 = vld [vmem:[%s3309_s4 + $0x3e0] sm:$0xff]   ;;  %v2523_v15 = vld [vmem:[%s3309_s4 + $0x3f0] sm:$0xff]  }
 0x2f7   :  { %1732 = vmatmul.mubr.bf16.vlgmr.msra.gmra.mrb[8].mxu0 %v3098_v17  ;;  %2218 = vmatprep.subr.bf16.mxu1 %v2467_v14  ;;  %v2522_v14 = vld [vmem:[%s3309_s4 + $0x3a8] sm:$0xff]   ;;  %v2525_v17 = vld [vmem:[%s3309_s4 + $0x3f8] sm:$0xff]  }
 0x2f8   :  { %2283 = vmatpush3.bf16.msra.mxu0 %v2466_v16  ;;  %1811 = vmatprep.mubr.bf16.mxu0 %v3104_v19  ;;  %v2524_v16 = vld [vmem:[%s3309_s4 + $0x3b0] sm:$0xff]   ;;  %v752_v19 = vcombine.high %v2979_v41, %v2979_v41 }
 0x2f9   :  { %2284 = vmatprep.subr.bf16.mxu0 %v2469_v18  ;;  %v2526_v18 = vld [vmem:[%s3309_s4 + $0x3b8] sm:$0xff]   ;;  %s2686_s4 = smov [#allocation11]  }
 0x2fa   :  { %2219 = vmatpush3.bf16.msra.mxu1 %v2468_v20  ;;  %v2527_v20 = vld [vmem:[#allocation8] sm:$0xff]   ;;  %s1979_s22 = sshll.u32 %s2686_s4, 4  ;;  %s1980_s22 = int_to_ptr.vmem [resolvable:$true] %s1979_s22 }
 0x2fb   :  { %2220 = vmatprep.subr.bf16.mxu1 %v2471_v22  ;;  %v2684_v22 = vmov 0.0   ;;  %s2645_s23 = scalar_lea.vmem %s1980_s22, 32  ;;  %p2650_p13 = scmp.lt.s32.totalorder %s1980_s22, %s1980_s22 }
 0x2fc   :  { %2285 = vmatpush3.bf16.msra.mxu0 %v2470_v23  ;;  %v2528_v23 = vld [vmem:[#allocation8 + $0x8] sm:$0xff]   ;;  %p2646_p12 = scmp.ne.s32.totalorder %s1980_s22, %s2645_s23  ;;  %p2651_p0 = scmp.lt.s32.totalorder %s2645_s23, %s2645_s23 }
 0x2fd   :  { %2286 = vmatprep.subr.bf16.mxu0 %v2473_v21  ;;  %v2529_v21 = vld [vmem:[#allocation8 + $0x10] sm:$0xff]  }
 0x2fe   :  { %2221 = vmatpush3.bf16.msra.mxu1 %v2472_v24  ;;  %v2530_v24 = vld [vmem:[#allocation8 + $0x18] sm:$0xff]   ;;  %p2652_p1 = por %p2651_p0, %p2650_p13 }
 0x2ff   :  { %2222 = vmatprep.subr.bf16.mxu1 %v2475_v25  ;;  %v2531_v25 = vld [vmem:[#allocation8 + $0x20] sm:$0xff]  }
 0x300   :  { %2287 = vmatpush3.bf16.msra.mxu0 %v2474_v26  ;;  %v2532_v26 = vld [vmem:[#allocation8 + $0x28] sm:$0xff]   ;;  %p2653_p2 = pnand %p2652_p1, %p2646_p12 }
 0x301   :  { %2288 = vmatprep.subr.bf16.mxu0 %v2477_v27 }
 0x302   :  { %2223 = vmatpush3.bf16.msra.mxu1 %v2476_v28  ;;  %v2533_v28 = vld [vmem:[#allocation8 + $0x30] sm:$0xff]  }
 0x303   :  { %2224 = vmatprep.subr.bf16.mxu1 %v2479_v29 }
 0x304   :  { %2289 = vmatpush3.bf16.msra.mxu0 %v2478_v30 }
 0x305   :  { %2290 = vmatprep.subr.bf16.mxu0 %v2481_v31 }
 0x306   :  { %2225 = vmatpush3.bf16.msra.mxu1 %v2480_v32 }
 0x307   :  { %2226 = vmatprep.subr.bf16.mxu1 %v2483_v33 }
 0x308   :  { %2291 = vmatpush3.bf16.msra.mxu0 %v2482_v34 }
 0x309   :  { %2292 = vmatprep.subr.bf16.mxu0 %v2485_v35 }
 0x30a   :  { %2227 = vmatpush3.bf16.msra.mxu1 %v2484_v36 }
 0x30b   :  { %2228 = vmatprep.subr.bf16.mxu1 %v2487_v37  ;;  %v2534_v37 = vld [vmem:[#allocation8 + $0x38] sm:$0xff]  }
 0x30c   :  { %2293 = vmatpush3.bf16.msra.mxu0 %v2486_v38  ;;  %v2007_v38 = vld [vmem:[#allocation7] ss:$0 sm:$0xff] }
 0x30d   :  { %2294 = vmatprep.subr.bf16.mxu0 %v2489_v39 }
 0x30e   :  { %2229 = vmatpush3.bf16.msra.mxu1 %v2488_v40 }
 0x30f   :  { %2230 = vmatprep.subr.bf16.mxu1 %v2491_v42 }
 0x310   :  { %2295 = vmatpush3.bf16.msra.mxu0 %v2490_v43 }
 0x311   :  { %2296 = vmatprep.subr.bf16.mxu0 %v2493_v45 }
 0x312   :  { %2231 = vmatpush3.bf16.msra.mxu1 %v2492_v47 }
 0x313   :  { %2260 = vmatprep.subr.bf16.mxu1 %v2495_v48 }
 0x314   :  { %2297 = vmatpush3.bf16.msra.mxu0 %v2494_v49 }
 0x315   :  { %1692 = vmatmul.mubr.bf16.vlgmr.msra.gmra.mrb[12].mxu1 %v703_v51  ;;  %2341 = vmatprep.subr.bf16.mxu0 %v2684_v22 }
 0x316   :  { %2261 = vmatpush3.bf16.msra.mxu1 %v2496_v50  ;;  %1771 = vmatprep.mubr.bf16.mxu1 %v753_v53 }
 0x317   :  { %1812 = vmatmul.mubr.bf16.vlgmr.msra.gmra.mrb[12].mxu0 %v2979_v41  ;;  %2262 = vmatprep.subr.bf16.mxu1 %v2497_v52 }
 0x318   :  { %2342 = vmatpush3.bf16.msra.mxu0 %v2527_v20  ;;  %2357 = vmatprep.mubr.msk.bf16.mxu0 %vm2685_vm4, %v2684_v22 }
 0x319   :  { %2343 = vmatprep.subr.bf16.mxu0 %v2684_v22 }
 0x31a   :  { %2263 = vmatpush3.bf16.msra.mxu1 %v2498_v54 }
 0x31b   :  { %2264 = vmatprep.subr.bf16.mxu1 %v2499_v44 }
 0x31c   :  { %2344 = vmatpush3.bf16.msra.mxu0 %v2528_v23 }
 0x31d   :  { %2345 = vmatprep.subr.bf16.mxu0 %v2684_v22 }
 0x31e   :  { %2265 = vmatpush3.bf16.msra.mxu1 %v2500_v55 }
 0x31f   :  { %2266 = vmatprep.subr.bf16.mxu1 %v2501_v46 }
 0x320   :  { %2346 = vmatpush3.bf16.msra.mxu0 %v2529_v21 }
 0x321   :  { %2347 = vmatprep.subr.bf16.mxu0 %v2684_v22 }
 0x322   :  { %2267 = vmatpush3.bf16.msra.mxu1 %v2502_v56 }
 0x323   :  { %2268 = vmatprep.subr.bf16.mxu1 %v2503_v57 }
 0x324   :  { %2348 = vmatpush3.bf16.msra.mxu0 %v2530_v24 }
 0x325   :  { %2349 = vmatprep.subr.bf16.mxu0 %v2684_v22 }
 0x326   :  { %2269 = vmatpush3.bf16.msra.mxu1 %v2504_v58 }
 0x327   :  { %2270 = vmatprep.subr.bf16.mxu1 %v2505_v59 }
 0x328   :  { %2350 = vmatpush3.bf16.msra.mxu0 %v2531_v25 }
 0x329   :  { %2351 = vmatprep.subr.bf16.mxu0 %v2684_v22 }
 0x32a   :  { %2271 = vmatpush3.bf16.msra.mxu1 %v2506_v60 }
 0x32b   :  { %2272 = vmatprep.subr.bf16.mxu1 %v2507_v61 }
 0x32c   :  { %2352 = vmatpush3.bf16.msra.mxu0 %v2532_v26 }
 0x32d   :  { %2353 = vmatprep.subr.bf16.mxu0 %v2684_v22 }
 0x32e   :  { %2273 = vmatpush3.bf16.msra.mxu1 %v2508_v62 }
 0x32f   :  { %2274 = vmatprep.subr.bf16.mxu1 %v2509_v63 }
 0x330   :  { %2354 = vmatpush3.bf16.msra.mxu0 %v2533_v28 }
 0x331   :  { %2355 = vmatprep.subr.bf16.mxu0 %v2684_v22 }
 0x332   :  { %2275 = vmatpush3.bf16.msra.mxu1 %v2510_v0 }
 0x333   :  { %2304 = vmatprep.subr.bf16.mxu1 %v2511_v1 }
 0x334   :  { %2356 = vmatpush3.bf16.msra.mxu0 %v2534_v37 }
 0x335   :  { %1772 = vmatmul.mubr.bf16.vlgmr.msra.gmra.mrb[16].mxu1 %v751_v3 }
 0x336   :  { %2305 = vmatpush3.bf16.msra.mxu1 %v2512_v2  ;;  %1851 = vmatprep.mubr.bf16.mxu1 %v754_v5 }
 0x337   :  { %2306 = vmatprep.subr.bf16.mxu1 %v2513_v4 }
 0x33a   :  { %2307 = vmatpush3.bf16.msra.mxu1 %v2514_v6 }
 0x33b   :  { %2308 = vmatprep.subr.bf16.mxu1 %v2515_v7 }
 0x33e   :  { %2309 = vmatpush3.bf16.msra.mxu1 %v2516_v8 }
 0x33f   :  { %2310 = vmatprep.subr.bf16.mxu1 %v2517_v9 }
 0x342   :  { %2311 = vmatpush3.bf16.msra.mxu1 %v2518_v10 }
 0x343   :  { %2312 = vmatprep.subr.bf16.mxu1 %v2519_v11 }
 0x346   :  { %2313 = vmatpush3.bf16.msra.mxu1 %v2520_v12 }
 0x347   :  { %2314 = vmatprep.subr.bf16.mxu1 %v2521_v13 }
 0x34a   :  { %2315 = vmatpush3.bf16.msra.mxu1 %v2522_v14 }
 0x34b   :  { %2316 = vmatprep.subr.bf16.mxu1 %v2523_v15 }
 0x34e   :  { %2317 = vmatpush3.bf16.msra.mxu1 %v2524_v16  ;;  %v2138_v16 = vld [vmem:[#allocation10] ss:$0 sm:$0xff] }
 0x34f   :  { %2318 = vmatprep.subr.bf16.mxu1 %v2525_v17 }
 0x352   :  { %2319 = vmatpush3.bf16.msra.mxu1 %v2526_v18 }
 0x355   :  { %1852 = vmatmul.mubr.bf16.vlgmr.msra.gmra.mrb[20].mxu1 %v752_v19 }
 0x3a8   :  { %v2166_v41 = vpop.f32.mrb[4].mxu1 }
 0x3a9   :  { %v2167_v27 = vpop.f32.mrb[5].mxu1 }
 0x3aa   :  { %v2168_v29 = vadd.f32 %v2167_v27, %v2166_v41  ;;  %v2169_v30 = vpop.f32.mrb[6].mxu1  ;;  %v2210_v31 = vpop.f32.mrb[4].mxu0 }
 0x3ab   :  { %v2170_v32 = vpop.f32.mrb[7].mxu1  ;;  %v2211_v33 = vpop.f32.mrb[5].mxu0 }
 0x3ac   :  { %v2212_v34 = vadd.f32 %v2211_v33, %v2210_v31  ;;  %v2213_v35 = vpop.f32.mrb[6].mxu0  ;;  %v1574_v42 = vadd.f32 %v2168_v29, %v2007_v38 }
 0x3ad   :  { %v2214_v36 = vpop.f32.mrb[7].mxu0 }
 0x3c8   :  { %v2188_v39 = vpop.f32.mrb[8].mxu1 }
 0x3c9   :  { %v2189_v40 = vpop.f32.mrb[9].mxu1 }
 0x3ca   :  { %v2190_v43 = vadd.f32 %v2189_v40, %v2188_v39  ;;  %v2191_v45 = vpop.f32.mrb[10].mxu1  ;;  %v2254_v47 = vpop.f32.mrb[8].mxu0 }
 0x3cb   :  { %v2192_v48 = vpop.f32.mrb[11].mxu1  ;;  %v2255_v49 = vpop.f32.mrb[9].mxu0 }
 0x3cc   :  { %v1614_v50 = vadd.f32 %v2190_v43, %v1574_v42  ;;  %v2256_v51 = vadd.f32 %v2255_v49, %v2254_v47  ;;  %v2257_v52 = vpop.f32.mrb[10].mxu0 }
 0x3cd   :  { %v2258_v53 = vpop.f32.mrb[11].mxu0 }
 0x3ce   :  { %v1654_v54 = vadd.f32 %v2212_v34, %v1614_v50 }
 0x3e8   :  { %v2232_v44 = vpop.f32.mrb[12].mxu1 }
 0x3e9   :  { %v2233_v55 = vpop.f32.mrb[13].mxu1 }
 0x3ea   :  { %v2234_v46 = vadd.f32 %v2233_v55, %v2232_v44  ;;  %v2235_v56 = vpop.f32.mrb[14].mxu1  ;;  %v2298_v57 = vpop.f32.mrb[12].mxu0 }
 0x3eb   :  { %v2236_v58 = vpop.f32.mrb[15].mxu1  ;;  %v2299_v59 = vpop.f32.mrb[13].mxu0 }
 0x3ec   :  { %v1694_v60 = vadd.f32 %v2234_v46, %v1654_v54  ;;  %v2300_v61 = vadd.f32 %v2299_v59, %v2298_v57  ;;  %v2301_v62 = vpop.f32.mrb[14].mxu0 }
 0x3ed   :  { %v2302_v63 = vpop.f32.mrb[15].mxu0 }
 0x3ee   :  { %v1734_v0 = vadd.f32 %v2256_v51, %v1694_v60 }
 0x408   :  { %v2276_v1 = vpop.f32.mrb[16].mxu1 }
 0x409   :  { %v2277_v2 = vpop.f32.mrb[17].mxu1 }
 0x40a   :  { %v2278_v3 = vadd.f32 %v2277_v2, %v2276_v1  ;;  %v2279_v4 = vpop.f32.mrb[18].mxu1 }
 0x40b   :  { %v2280_v5 = vpop.f32.mrb[19].mxu1 }
 0x40c   :  { %v1774_v6 = vadd.f32 %v2278_v3, %v1734_v0 }
 0x40e   :  { %v1814_v7 = vadd.f32 %v2300_v61, %v1774_v6 }
 0x428   :  { %v2320_v8 = vpop.f32.mrb[20].mxu1 }
 0x429   :  { %v2321_v9 = vpop.f32.mrb[21].mxu1 }
 0x42a   :  { %v2322_v10 = vadd.f32 %v2321_v9, %v2320_v8  ;;  %v2323_v11 = vpop.f32.mrb[22].mxu1 }
 0x42b   :  { %v2324_v12 = vpop.f32.mrb[23].mxu1 }
 0x42c   :  { %v1854_v13 = vadd.f32 %v2322_v10, %v1814_v7 }
 0x42e   :  { %v1859_v14 = vmax.f32 %v1854_v13, 0.0 }
 0x430   :  { %v1860_v15 = vpack.c.bf16 %v1859_v14, %v1859_v14 }
 0x432   :  { %2358 = vmatmul.mubr.bf16.vlgmr.msra.gmra.mrb[16].mxu0 %v1860_v15 }
 0x505   :  { %v1966_v17 = vpop.f32.mrb[16].mxu0 }
 0x506   :  { %v1967_v18 = vadd.f32 %v2138_v16, %v1966_v17  ;;  %v2359_v19 = vpop.f32.mrb[17].mxu0 }
 0x507   :  { %v1969_v20 = vpop.f32.mrb[18].mxu0 }
 0x508   :  { %1972 = vst [vmem:[#allocation11] sm:$0x3] %v1967_v18  ;;  %v2360_v22 = vpop.f32.mrb[19].mxu0 }
 0x509   :  { %2656 = shalt.err (!%p2653_p2)
}
 0x50a   :  { %s2657_s25 = scalar_lea.hbm %s3313_s8, 32 }
 0x50b   :  { %p2658_p3 = scmp.ne.s32.totalorder %s3313_s8, %s2657_s25  ;;  %p2661_p4 = scmp.lt.u32.totalorder %s2657_s25, %s3313_s8 }
 0x50d   :  { %p2663_p5 = pnand %p2661_p4, %p2658_p3 }
 0x50f   :  { %2666 = shalt.err (!%p2663_p5)
}
 0x510   :  { %1982 = dma.vmem_to_hbm [thread:$0]  %s1980_s22, 32, %s3313_s8, [#allocation4]  }
 0x511   :  { %2673 = dma.done.wait [#allocation4], 32  }
 0x512   :  { %2674 = vsyncadd [#allocation4], 4294967264 }
 0x513   :  { %1986 = vsyncpa [#allocation3], 1 }
 0x514   :  { %1987 = vsyncpa [#allocation6], 1 }
 0x515   :  { %1988 = vsyncpa [#allocation9], 1 }
 0x516   :  { %1989 = vsyncpa [#allocation4], 1 }

</bundles_post_ra>
